<compile_context>
chip_gen: v7x
topology: tpu7x:2x2x1
jax: 0.10.0
libtpu: 0.0.40
codegen_flags: <defaults>
</compile_context>

<pallas_src>
import jax
import jax.numpy as jnp
import numpy as np
from jax.experimental import pallas as pl
from jax.experimental.pallas import tpu as pltpu


# --------------------------------------------------------------------------
# Kernel
# --------------------------------------------------------------------------
def _make_kernel(rank, use_rank_fma, fuse_outconv):
    """Kernel factory: rank / path flags are static (baked at trace time)."""

    def _bd(bm_ref, dt_ref, e_ref):
        # bd[r, i*W + j] = Bm[r, i] * D[r, j], rebuilt on-chip per tile:
        # Bm expands across lanes via a tiny 0/1 matmul; D arrives pre-tiled
        # (tile-invariant), so no (B, R, H*W) tensor is ever materialized.
        bm_exp = jnp.dot(bm_ref[...], e_ref[...],
                         preferred_element_type=jnp.float32)
        return bm_exp * dt_ref[...]                                # (R, THW) f32

    def _tensor_t(at, bd):
        # t[c, l] = sum_r at[c, r] * bd[r, l]
        if use_rank_fma:
            # C, R tiny: unrolled lane-dense VPU FMAs (no MXU push/drain floor).
            t = at[:, 0:1] * bd[0:1, :]
            for r in range(1, rank):
                t = t + at[:, r:r + 1] * bd[r:r + 1, :]
            return t
        return jnp.dot(at, bd, preferred_element_type=jnp.float32)

    if fuse_outconv:
        def kernel(x_ref, at_ref, bm_ref, dt_ref, e_ref, w_ref, b_ref, o_ref):
            cdt = x_ref.dtype
            x = x_ref[...]                                          # (C, THW)
            t = _tensor_t(at_ref[...], _bd(bm_ref, dt_ref, e_ref))  # (C, THW) f32
            relu = jnp.maximum(x.astype(jnp.float32) * t, 0.0)
            # out_conv(concat([x, relu])): one 2C-deep MXU contraction.
            cat = jnp.concatenate([x, relu.astype(cdt)], axis=0)    # (2C, THW)
            out = jnp.dot(w_ref[...], cat,
                          preferred_element_type=jnp.float32) + b_ref[...]
            o_ref[...] = out.astype(o_ref.dtype)
        return kernel

    def kernel(x_ref, at_ref, bm_ref, dt_ref, e_ref, wa_ref, wb_ref, b_ref,
               o_ref):
        cdt = x_ref.dtype
        x = x_ref[...]
        t = _tensor_t(at_ref[...], _bd(bm_ref, dt_ref, e_ref))
        relu = jnp.maximum(x.astype(jnp.float32) * t, 0.0)
        # out_conv(concat([x, relu])) == Wa @ x + Wb @ relu + bias.
        out = (jnp.dot(wa_ref[...], x, preferred_element_type=jnp.float32)
               + jnp.dot(wb_ref[...], relu.astype(cdt),
                         preferred_element_type=jnp.float32)
               + b_ref[...])
        o_ref[...] = out.astype(o_ref.dtype)

    return kernel


# --------------------------------------------------------------------------
# Tiling / VMEM heuristics
# --------------------------------------------------------------------------
def _vmem_estimate(c, rank, th, w, itemsize, fuse):
    """Conservative VMEM bytes: 2 pipeline buffers for every block plus the
    live f32 temporaries of one kernel invocation."""
    thw = th * w
    nbuf = 2
    stream = nbuf * (2 * c * thw) * itemsize                  # x + out blocks
    factors = nbuf * 4 * (rank * thw + rank * th + c * rank)  # D_tiled, Bm, AT
    expand = nbuf * 4 * th * thw                              # E (f32, const)
    weights = nbuf * (2 * c * c * itemsize + 4 * c)           # out_conv w + b
    temps = 4 * (2 * rank + 5 * c) * thw                      # bm_exp/bd/t/relu
    if fuse:
        temps += 2 * c * thw * itemsize                       # concat buffer
    return stream + factors + expand + weights + temps


def _choose_tile_rows(h, w, c, batch, rank, itemsize, fuse, budget):
    cands = [th for th in range(1, h + 1)
             if h % th == 0 and (th == h or (th * w) % 128 == 0)]
    def est(th):
        return _vmem_estimate(c, rank, th, w, itemsize, fuse)
    fitting = [th for th in cands if est(th) <= budget]
    if not fitting:
        return min(cands, key=est)

    def score(th):
        thw = th * w
        return (
            batch > 1 or th < h,    # b == 1: keep >= 2 grid blocks (v7x 2 TCs)
            th <= max(8, c),        # bound E-expansion FLOPs / footprint
            thw % 256 == 0,         # MXU-width-aligned lanes (v6e/v7x)
            thw >= 512,             # DMA efficiency floor
            thw,                    # then as big as fits
        )
    return max(fitting, key=score)


def _vmem_capacity_bytes():
    try:
        cap = getattr(pltpu.get_tpu_info(), "vmem_capacity_bytes", None)
        if cap:
            return int(cap)
    except Exception:
        pass
    return 64 * 1024 * 1024   # conservative default (v7x per-core VMEM)


# --------------------------------------------------------------------------
# Forward wrapper
# --------------------------------------------------------------------------
def tgm_trm_forward(x, params, rank, *, tile_rows=None, vmem_budget_bytes=None):
    b, c, h, w = x.shape
    assert h == w, "module assumes square input (h == w == self.h)"
    hw = h * w
    dt = x.dtype
    itemsize = jnp.dtype(dt).itemsize
    f32 = jnp.float32

    # ---- glue (always f32): the three AdaptiveAvgPool2d(1) reductions done
    # as two reduction passes over x instead of three independent means ----
    xf = x.astype(f32)
    s_w = jnp.sum(xf, axis=3)                           # (b, c, h)   pass 1
    c_vec = jnp.sum(s_w, axis=2) * (1.0 / hw)           # pool(x)          (b, c)
    w_vec = jnp.sum(s_w, axis=1) * (1.0 / (c * w))      # pool over (c, w) (b, h)
    h_vec = jnp.sum(xf, axis=(1, 2)) * (1.0 / (c * h))  # pool over (c, h) (b, w)

    # ---- rank-wise 1x1 convs (no bias) + sigmoid on pooled features ----
    w1 = params["w1"].astype(f32)
    w2 = params["w2"].astype(f32)
    w3 = params["w3"].astype(f32)
    lam = params["lam"].astype(f32)
    A = jax.nn.sigmoid(jnp.einsum("roc,bc->rbo", w1, c_vec))     # (R, b, c)
    Bm = jax.nn.sigmoid(jnp.einsum("roc,bc->rbo", w2, h_vec))    # (R, b, h) rows
    D = jax.nn.sigmoid(jnp.einsum("roc,bc->rbo", w3, w_vec))     # (R, b, w) cols

    AT = jnp.transpose(A * lam[:, None, None], (1, 2, 0))        # (b, c, R)
    Bm_b = jnp.transpose(Bm, (1, 0, 2))                          # (b, R, h)
    D_b = jnp.transpose(D, (1, 0, 2))                            # (b, R, w)

    # ---- static kernel-path selection ----
    use_rank_fma = (c <= 8) and (rank <= 16)
    sub = 8 if itemsize == 4 else 16
    fuse_outconv = (c % sub == 0) and (c >= sub)

    vmem_cap = _vmem_capacity_bytes()
    if vmem_budget_bytes is None:
        vmem_budget_bytes = (3 * vmem_cap) // 8      # 24 MiB v7x / 48 MiB v5e-v6e
    if tile_rows is None:
        tile_rows = _choose_tile_rows(h, w, c, b, rank, itemsize, fuse_outconv,
                                      vmem_budget_bytes)
    assert h % tile_rows == 0
    assert tile_rows == h or (tile_rows * w) % 128 == 0
    n_tiles = h // tile_rows
    thw = tile_rows * w

    # Height factor per (batch, row-tile) block: (b, n_tiles, R, tile_rows).
    Bm_t = Bm_b.reshape(b, rank, n_tiles, tile_rows).transpose(0, 2, 1, 3)
    # Width factor pre-tiled across one tile's rows: tile-invariant, streamed
    # once per batch element (replaces the old F 0/1-expansion matmul).
    D_tiled = jnp.tile(D_b, (1, 1, tile_rows))                   # (b, R, thw)
    # 0/1 lane-expansion for the height factor: e[i, i*W + j] = 1.
    e_mat = jnp.asarray(
        np.repeat(np.eye(tile_rows, dtype=np.float32), w, axis=1))  # (TH, thw)

    bias = params["b_out"].astype(f32).reshape(c, 1)
    x_flat = x.reshape(b, c, hw)

    est = _vmem_estimate(c, rank, tile_rows, w, itemsize, fuse_outconv)
    vmem_limit = int(min((3 * vmem_cap) // 4, max(32 << 20, 2 * est)))

    flops = 2 * b * hw * (c * rank + 2 * c * c + rank * tile_rows)
    bytes_accessed = 2 * b * c * hw * itemsize + 4 * b * rank * (thw + h + c)
    cost = pl.CostEstimate(flops=int(flops), transcendentals=0,
                           bytes_accessed=int(bytes_accessed))

    kernel = _make_kernel(rank, use_rank_fma, fuse_outconv)

    in_specs = [
        pl.BlockSpec((None, c, thw), lambda i, j: (i, 0, j)),            # x
        pl.BlockSpec((None, c, rank), lambda i, j: (i, 0, 0)),           # AT
        pl.BlockSpec((None, None, rank, tile_rows),
                     lambda i, j: (i, j, 0, 0)),                         # Bm
        pl.BlockSpec((None, rank, thw), lambda i, j: (i, 0, 0)),         # D_tiled
        pl.BlockSpec((tile_rows, thw), lambda i, j: (0, 0)),             # E
    ]
    # TODO(synk): mark E / weights / bias as pipeline_mode=pl.Buffered(1)
    # (constant index) once single-buffered BlockSpecs are verified on the
    # deployed jax build.
    if fuse_outconv:
        w_cat = params["w_out"].astype(dt)                               # (c, 2c)
        weight_args = (w_cat, bias)
        in_specs += [pl.BlockSpec((c, 2 * c), lambda i, j: (0, 0)),
                     pl.BlockSpec((c, 1), lambda i, j: (0, 0))]
    else:
        wa = params["w_out"][:, :c].astype(dt)
        wb = params["w_out"][:, c:].astype(dt)
        weight_args = (wa, wb, bias)
        in_specs += [pl.BlockSpec((c, c), lambda i, j: (0, 0)),
                     pl.BlockSpec((c, c), lambda i, j: (0, 0)),
                     pl.BlockSpec((c, 1), lambda i, j: (0, 0))]

    out = pl.pallas_call(
        kernel,
        out_shape=jax.ShapeDtypeStruct((b, c, hw), dt),
        grid=(b, n_tiles),
        in_specs=in_specs,
        out_specs=pl.BlockSpec((None, c, thw), lambda i, j: (i, 0, j)),
        compiler_params=pltpu.CompilerParams(
            dimension_semantics=("parallel", "parallel"),
            vmem_limit_bytes=vmem_limit),
        cost_estimate=cost,
    )(x_flat, AT, Bm_t, D_tiled, e_mat, *weight_args)

    return out.reshape(b, c, h, w)


# --------------------------------------------------------------------------
# Reference + params
# --------------------------------------------------------------------------
def reference_forward(x, params, rank):
    """Pure-JAX transcription of the PyTorch forward, for verification."""
    b, c, h, w = x.shape
    c_vec = jnp.mean(x, axis=(2, 3))
    h_vec = jnp.mean(x, axis=(1, 2))
    w_vec = jnp.mean(x, axis=(1, 3))
    A = jax.nn.sigmoid(jnp.einsum("roc,bc->rbo", params["w1"], c_vec))
    Bm = jax.nn.sigmoid(jnp.einsum("roc,bc->rbo", params["w2"], h_vec))
    D = jax.nn.sigmoid(jnp.einsum("roc,bc->rbo", params["w3"], w_vec))
    t = jnp.einsum("r,rbc,rbj,rbk->bcjk", params["lam"], A, Bm, D)
    cat = jnp.concatenate([x, jax.nn.relu(x * t)], axis=1)
    out = (jnp.einsum("oc,bcjk->bojk", params["w_out"], cat)
           + params["b_out"][None, :, None, None])
    return out


def init_params(key, c, h, rank):
    """kaiming_normal_(mode='fan_out') for 1x1 convs => std = sqrt(2 / out_ch)."""
    k1, k2, k3, k4, k5 = jax.random.split(key, 5)
    w1 = jax.random.normal(k1, (rank, c, c), jnp.float32) * np.sqrt(2.0 / c)
    w2 = jax.random.normal(k2, (rank, h, h), jnp.float32) * np.sqrt(2.0 / h)
    w3 = jax.random.normal(k3, (rank, h, h), jnp.float32) * np.sqrt(2.0 / h)
    lam = jnp.ones((rank,), jnp.float32)
    w_out = jax.random.normal(k4, (c, 2 * c), jnp.float32) * np.sqrt(2.0 / c)
    b_out = jax.random.normal(k5, (c,), jnp.float32) * 0.01
    return {"w1": w1, "w2": w2, "w3": w3, "lam": lam,
            "w_out": w_out, "b_out": b_out}


if __name__ == "__main__":
    key = jax.random.PRNGKey(0)
    kx1, kp1, kx2, kp2 = jax.random.split(key, 4)

    # --- Test 1: module-spec toy shapes (rank-FMA + split out_conv path) ---
    b, c, h, rank = 2, 4, 16, 8
    x = jax.random.normal(kx1, (b, c, h, h), jnp.float32)
    params = init_params(kp1, c, h, rank)
    ref = jax.block_until_ready(reference_forward(x, params, rank))

    out_auto = jax.block_until_ready(tgm_trm_forward(x, params, rank))
    np.testing.assert_allclose(np.asarray(out_auto), np.asarray(ref),
                               rtol=5e-4, atol=5e-4)

    out_full = jax.block_until_ready(
        tgm_trm_forward(x, params, rank, tile_rows=h))    # single-tile path
    np.testing.assert_allclose(np.asarray(out_full), np.asarray(ref),
                               rtol=5e-4, atol=5e-4)

    # bf16 I/O (factor / glue math stays f32 inside): halves HBM/VMEM traffic.
    out_bf16 = jax.block_until_ready(
        tgm_trm_forward(x.astype(jnp.bfloat16), params, rank))
    out_bf16 = np.asarray(out_bf16, dtype=np.float32)
    assert np.all(np.isfinite(out_bf16))
    np.testing.assert_allclose(out_bf16, np.asarray(ref), rtol=1e-1, atol=2.5e-1)

    # --- Test 2: larger C, batch=1 (MXU t-matmul + fused 2C-deep out_conv,
    #             >= 2 row tiles so both v7x TensorCores get work) ---
    b2, c2, h2, rank2 = 1, 16, 32, 8
    x2 = jax.random.normal(kx2, (b2, c2, h2, h2), jnp.float32)
    params2 = init_params(kp2, c2, h2, rank2)
    ref2 = jax.block_until_ready(reference_forward(x2, params2, rank2))
    out2 = jax.block_until_ready(tgm_trm_forward(x2, params2, rank2))
    np.testing.assert_allclose(np.asarray(out2), np.asarray(ref2),
                               rtol=1e-3, atol=1e-3)

    print("KERNEL_OK")
</pallas_src>

<mosaic_0001>
module attributes {stable_mosaic.version = 11 : i64} {
  func.func @kernel(%arg0: i32, %arg1: i32, %arg2: memref<1x4x128xf32, #tpu.memory_space<vmem>>, %arg3: memref<1x4x8xf32, #tpu.memory_space<vmem>>, %arg4: memref<1x1x8x8xf32, #tpu.memory_space<vmem>>, %arg5: memref<1x8x128xf32, #tpu.memory_space<vmem>>, %arg6: memref<8x128xf32, #tpu.memory_space<vmem>>, %arg7: memref<4x4xf32, #tpu.memory_space<vmem>>, %arg8: memref<4x4xf32, #tpu.memory_space<vmem>>, %arg9: memref<4x1xf32, #tpu.memory_space<vmem>>, %arg10: memref<1x4x128xf32, #tpu.memory_space<vmem>>) attributes {dimension_semantics = [#tpu.dimension_semantics<parallel>, #tpu.dimension_semantics<parallel>], iteration_bounds = array<i64: 2, 2>, scalar_prefetch = 0 : i64, scratch_operands = 0 : i64, tpu.core_type = #tpu.core_type<tc>, window_params = [{transform_indices = @transform_0, window_bounds = array<i64: 1, 4, 128>}, {transform_indices = @transform_1, window_bounds = array<i64: 1, 4, 8>}, {transform_indices = @transform_2, window_bounds = array<i64: 1, 1, 8, 8>}, {transform_indices = @transform_3, window_bounds = array<i64: 1, 8, 128>}, {pipeline_mode = #tpu.pipeline_mode<synchronous>, transform_indices = @transform_4, window_bounds = array<i64: 8, 128>}, {pipeline_mode = #tpu.pipeline_mode<synchronous>, transform_indices = @transform_5, window_bounds = array<i64: 4, 4>}, {pipeline_mode = #tpu.pipeline_mode<synchronous>, transform_indices = @transform_6, window_bounds = array<i64: 4, 4>}, {pipeline_mode = #tpu.pipeline_mode<synchronous>, transform_indices = @transform_7, window_bounds = array<i64: 4, 1>}, {transform_indices = @transform_8, window_bounds = array<i64: 1, 4, 128>}]} {
    %c0 = arith.constant 0 : index
    %c0_0 = arith.constant 0 : index
    %c0_1 = arith.constant 0 : index
    %0 = vector.load %arg2[%c0, %c0_0, %c0_1] : memref<1x4x128xf32, #tpu.memory_space<vmem>>, vector<1x4x128xf32>
    %1 = vector.shape_cast %0 : vector<1x4x128xf32> to vector<4x128xf32>
    %c0_2 = arith.constant 0 : index
    %c0_3 = arith.constant 0 : index
    %c0_4 = arith.constant 0 : index
    %2 = vector.load %arg3[%c0_2, %c0_3, %c0_4] : memref<1x4x8xf32, #tpu.memory_space<vmem>>, vector<1x4x8xf32>
    %3 = vector.shape_cast %2 : vector<1x4x8xf32> to vector<4x8xf32>
    %c0_5 = arith.constant 0 : index
    %c0_6 = arith.constant 0 : index
    %c0_7 = arith.constant 0 : index
    %c0_8 = arith.constant 0 : index
    %4 = vector.load %arg4[%c0_5, %c0_6, %c0_7, %c0_8] : memref<1x1x8x8xf32, #tpu.memory_space<vmem>>, vector<1x1x8x8xf32>
    %5 = vector.shape_cast %4 : vector<1x1x8x8xf32> to vector<8x8xf32>
    %c0_9 = arith.constant 0 : index
    %c0_10 = arith.constant 0 : index
    %6 = vector.load %arg6[%c0_9, %c0_10] : memref<8x128xf32, #tpu.memory_space<vmem>>, vector<8x128xf32>
    %cst = arith.constant dense<0.000000e+00> : vector<8x128xf32>
    %7 = tpu.matmul %5, %6, %cst {dimension_numbers = #tpu.dot_dimension_numbers<[1], [0], [0], [1], [0, 0, 1, 1], [], []>} : vector<8x8xf32>, vector<8x128xf32>, vector<8x128xf32> -> vector<8x128xf32>
    %c0_11 = arith.constant 0 : index
    %c0_12 = arith.constant 0 : index
    %c0_13 = arith.constant 0 : index
    %8 = vector.load %arg5[%c0_11, %c0_12, %c0_13] : memref<1x8x128xf32, #tpu.memory_space<vmem>>, vector<1x8x128xf32>
    %9 = vector.shape_cast %8 : vector<1x8x128xf32> to vector<8x128xf32>
    %10 = arith.mulf %7, %9 : vector<8x128xf32>
    %11 = vector.extract_strided_slice %3 {offsets = [0, 0], sizes = [4, 1], strides = [1, 1]} : vector<4x8xf32> to vector<4x1xf32>
    %12 = vector.extract_strided_slice %10 {offsets = [0, 0], sizes = [1, 128], strides = [1, 1]} : vector<8x128xf32> to vector<1x128xf32>
    %13 = vector.broadcast %11 : vector<4x1xf32> to vector<4x128xf32>
    %14 = vector.broadcast %12 : vector<1x128xf32> to vector<4x128xf32>
    %15 = arith.mulf %13, %14 : vector<4x128xf32>
    %16 = vector.extract_strided_slice %3 {offsets = [0, 1], sizes = [4, 1], strides = [1, 1]} : vector<4x8xf32> to vector<4x1xf32>
    %17 = vector.extract_strided_slice %10 {offsets = [1, 0], sizes = [1, 128], strides = [1, 1]} : vector<8x128xf32> to vector<1x128xf32>
    %18 = vector.broadcast %16 : vector<4x1xf32> to vector<4x128xf32>
    %19 = vector.broadcast %17 : vector<1x128xf32> to vector<4x128xf32>
    %20 = arith.mulf %18, %19 : vector<4x128xf32>
    %21 = arith.addf %15, %20 : vector<4x128xf32>
    %22 = vector.extract_strided_slice %3 {offsets = [0, 2], sizes = [4, 1], strides = [1, 1]} : vector<4x8xf32> to vector<4x1xf32>
    %23 = vector.extract_strided_slice %10 {offsets = [2, 0], sizes = [1, 128], strides = [1, 1]} : vector<8x128xf32> to vector<1x128xf32>
    %24 = vector.broadcast %22 : vector<4x1xf32> to vector<4x128xf32>
    %25 = vector.broadcast %23 : vector<1x128xf32> to vector<4x128xf32>
    %26 = arith.mulf %24, %25 : vector<4x128xf32>
    %27 = arith.addf %21, %26 : vector<4x128xf32>
    %28 = vector.extract_strided_slice %3 {offsets = [0, 3], sizes = [4, 1], strides = [1, 1]} : vector<4x8xf32> to vector<4x1xf32>
    %29 = vector.extract_strided_slice %10 {offsets = [3, 0], sizes = [1, 128], strides = [1, 1]} : vector<8x128xf32> to vector<1x128xf32>
    %30 = vector.broadcast %28 : vector<4x1xf32> to vector<4x128xf32>
    %31 = vector.broadcast %29 : vector<1x128xf32> to vector<4x128xf32>
    %32 = arith.mulf %30, %31 : vector<4x128xf32>
    %33 = arith.addf %27, %32 : vector<4x128xf32>
    %34 = vector.extract_strided_slice %3 {offsets = [0, 4], sizes = [4, 1], strides = [1, 1]} : vector<4x8xf32> to vector<4x1xf32>
    %35 = vector.extract_strided_slice %10 {offsets = [4, 0], sizes = [1, 128], strides = [1, 1]} : vector<8x128xf32> to vector<1x128xf32>
    %36 = vector.broadcast %34 : vector<4x1xf32> to vector<4x128xf32>
    %37 = vector.broadcast %35 : vector<1x128xf32> to vector<4x128xf32>
    %38 = arith.mulf %36, %37 : vector<4x128xf32>
    %39 = arith.addf %33, %38 : vector<4x128xf32>
    %40 = vector.extract_strided_slice %3 {offsets = [0, 5], sizes = [4, 1], strides = [1, 1]} : vector<4x8xf32> to vector<4x1xf32>
    %41 = vector.extract_strided_slice %10 {offsets = [5, 0], sizes = [1, 128], strides = [1, 1]} : vector<8x128xf32> to vector<1x128xf32>
    %42 = vector.broadcast %40 : vector<4x1xf32> to vector<4x128xf32>
    %43 = vector.broadcast %41 : vector<1x128xf32> to vector<4x128xf32>
    %44 = arith.mulf %42, %43 : vector<4x128xf32>
    %45 = arith.addf %39, %44 : vector<4x128xf32>
    %46 = vector.extract_strided_slice %3 {offsets = [0, 6], sizes = [4, 1], strides = [1, 1]} : vector<4x8xf32> to vector<4x1xf32>
    %47 = vector.extract_strided_slice %10 {offsets = [6, 0], sizes = [1, 128], strides = [1, 1]} : vector<8x128xf32> to vector<1x128xf32>
    %48 = vector.broadcast %46 : vector<4x1xf32> to vector<4x128xf32>
    %49 = vector.broadcast %47 : vector<1x128xf32> to vector<4x128xf32>
    %50 = arith.mulf %48, %49 : vector<4x128xf32>
    %51 = arith.addf %45, %50 : vector<4x128xf32>
    %52 = vector.extract_strided_slice %3 {offsets = [0, 7], sizes = [4, 1], strides = [1, 1]} : vector<4x8xf32> to vector<4x1xf32>
    %53 = vector.extract_strided_slice %10 {offsets = [7, 0], sizes = [1, 128], strides = [1, 1]} : vector<8x128xf32> to vector<1x128xf32>
    %54 = vector.broadcast %52 : vector<4x1xf32> to vector<4x128xf32>
    %55 = vector.broadcast %53 : vector<1x128xf32> to vector<4x128xf32>
    %56 = arith.mulf %54, %55 : vector<4x128xf32>
    %57 = arith.addf %51, %56 : vector<4x128xf32>
    %58 = arith.mulf %1, %57 : vector<4x128xf32>
    %cst_14 = arith.constant 0.000000e+00 : f32
    %59 = vector.broadcast %cst_14 : f32 to vector<4x128xf32>
    %60 = arith.maximumf %58, %59 : vector<4x128xf32>
    %c0_15 = arith.constant 0 : index
    %c0_16 = arith.constant 0 : index
    %61 = vector.load %arg7[%c0_15, %c0_16] : memref<4x4xf32, #tpu.memory_space<vmem>>, vector<4x4xf32>
    %cst_17 = arith.constant dense<0.000000e+00> : vector<4x128xf32>
    %62 = tpu.matmul %61, %1, %cst_17 {dimension_numbers = #tpu.dot_dimension_numbers<[1], [0], [0], [1], [0, 0, 1, 1], [], []>} : vector<4x4xf32>, vector<4x128xf32>, vector<4x128xf32> -> vector<4x128xf32>
    %c0_18 = arith.constant 0 : index
    %c0_19 = arith.constant 0 : index
    %63 = vector.load %arg8[%c0_18, %c0_19] : memref<4x4xf32, #tpu.memory_space<vmem>>, vector<4x4xf32>
    %cst_20 = arith.constant dense<0.000000e+00> : vector<4x128xf32>
    %64 = tpu.matmul %63, %60, %cst_20 {dimension_numbers = #tpu.dot_dimension_numbers<[1], [0], [0], [1], [0, 0, 1, 1], [], []>} : vector<4x4xf32>, vector<4x128xf32>, vector<4x128xf32> -> vector<4x128xf32>
    %65 = arith.addf %62, %64 : vector<4x128xf32>
    %c0_21 = arith.constant 0 : index
    %c0_22 = arith.constant 0 : index
    %66 = vector.load %arg9[%c0_21, %c0_22] : memref<4x1xf32, #tpu.memory_space<vmem>>, vector<4x1xf32>
    %67 = vector.broadcast %66 : vector<4x1xf32> to vector<4x128xf32>
    %68 = arith.addf %65, %67 : vector<4x128xf32>
    %c0_23 = arith.constant 0 : index
    %c0_24 = arith.constant 0 : index
    %c0_25 = arith.constant 0 : index
    %69 = vector.load %arg10[%c0_23, %c0_24, %c0_25] : memref<1x4x128xf32, #tpu.memory_space<vmem>>, vector<1x4x128xf32>
    %70 = vector.shape_cast %69 : vector<1x4x128xf32> to vector<4x128xf32>
    %71 = vector.shape_cast %68 : vector<4x128xf32> to vector<1x4x128xf32>
    tpu.vector_store %arg10[%c0_23, %c0_24, %c0_25], %71 {strides = array<i32>} : memref<1x4x128xf32, #tpu.memory_space<vmem>>, vector<1x4x128xf32>,
    return
  }
  func.func @transform_0(%arg0: i32, %arg1: i32) -> (i32, i32, i32) {
    %c0_i32 = arith.constant 0 : i32
    %c0_i32_0 = arith.constant 0 : i32
    return %arg0, %c0_i32, %arg1 : i32, i32, i32
  }
  func.func @transform_1(%arg0: i32, %arg1: i32) -> (i32, i32, i32) {
    %c0_i32 = arith.constant 0 : i32
    %c0_i32_0 = arith.constant 0 : i32
    %c0_i32_1 = arith.constant 0 : i32
    return %arg0, %c0_i32, %c0_i32_0 : i32, i32, i32
  }
  func.func @transform_2(%arg0: i32, %arg1: i32) -> (i32, i32, i32, i32) {
    %c0_i32 = arith.constant 0 : i32
    %c0_i32_0 = arith.constant 0 : i32
    %c0_i32_1 = arith.constant 0 : i32
    return %arg0, %arg1, %c0_i32, %c0_i32_0 : i32, i32, i32, i32
  }
  func.func @transform_3(%arg0: i32, %arg1: i32) -> (i32, i32, i32) {
    %c0_i32 = arith.constant 0 : i32
    %c0_i32_0 = arith.constant 0 : i32
    %c0_i32_1 = arith.constant 0 : i32
    return %arg0, %c0_i32, %c0_i32_0 : i32, i32, i32
  }
  func.func @transform_4(%arg0: i32, %arg1: i32) -> (i32, i32) {
    %c0_i32 = arith.constant 0 : i32
    %c0_i32_0 = arith.constant 0 : i32
    %c0_i32_1 = arith.constant 0 : i32
    return %c0_i32, %c0_i32_0 : i32, i32
  }
  func.func @transform_5(%arg0: i32, %arg1: i32) -> (i32, i32) {
    %c0_i32 = arith.constant 0 : i32
    %c0_i32_0 = arith.constant 0 : i32
    %c0_i32_1 = arith.constant 0 : i32
    return %c0_i32, %c0_i32_0 : i32, i32
  }
  func.func @transform_6(%arg0: i32, %arg1: i32) -> (i32, i32) {
    %c0_i32 = arith.constant 0 : i32
    %c0_i32_0 = arith.constant 0 : i32
    %c0_i32_1 = arith.constant 0 : i32
    return %c0_i32, %c0_i32_0 : i32, i32
  }
  func.func @transform_7(%arg0: i32, %arg1: i32) -> (i32, i32) {
    %c0_i32 = arith.constant 0 : i32
    %c0_i32_0 = arith.constant 0 : i32
    %c0_i32_1 = arith.constant 0 : i32
    return %c0_i32, %c0_i32_0 : i32, i32
  }
  func.func @transform_8(%arg0: i32, %arg1: i32) -> (i32, i32, i32) {
    %c0_i32 = arith.constant 0 : i32
    %c0_i32_0 = arith.constant 0 : i32
    return %arg0, %c0_i32, %arg1 : i32, i32, i32
  }
}

</mosaic_0001>

<bundles_post_ra>
// kernel: tpu_custom_call.1
= control target key start
LH: loop header
LB: loop body
LE: loop exit
PB: predicated region body
PF: predicated region fallthrough
CT: control target
= control target key end

     0   :  { %s1856_s0 = inlined_call_operand.hbm [shape: f32[2,4,256], index: 0, kind: input, shape index: {}]   ;;  %s1857_s1 = inlined_call_operand.hbm [shape: f32[2,4,8], index: 1, kind: input, shape index: {}]   ;;  %s1858_s2 = inlined_call_operand.hbm [shape: f32[2,2,8,8], index: 2, kind: input, shape index: {}]   ;;  %s1859_s3 = inlined_call_operand.vmem [shape: f32[2,8,128], index: 3, kind: input, shape index: {}]   ;;  %s1860_s4 = inlined_call_operand.hbm [shape: f32[8,128], index: 4, kind: input, shape index: {}]   ;;  %s1861_s5 = inlined_call_operand.vmem [shape: f32[4,4], index: 5, kind: input, shape index: {}]   ;;  %s1862_s6 = inlined_call_operand.vmem [shape: f32[4,4], index: 6, kind: input, shape index: {}]   ;;  %s1863_s7 = inlined_call_operand.vmem [shape: f32[4,1], index: 7, kind: input, shape index: {}]   ;;  %s1864_s8 = inlined_call_operand.hbm [shape: f32[2,4,256], index: 8, kind: output, shape index: {}]  }
   0x1   :  { %1883 = sst [smem:[#allocation24_spill]] %s1857_s1 }
   0x2   :  { %1884 = sst [smem:[#allocation25_spill]] %s1859_s3 }
   0x3   :  { %1885 = sst [smem:[#allocation26_spill]] %s1860_s4 }
   0x4   :  { %1886 = sst [smem:[#allocation27_spill]] %s1861_s5 }
   0x5   :  { %1887 = sst [smem:[#allocation28_spill]] %s1862_s6 }
   0x6   :  { %1888 = sst [smem:[#allocation29_spill]] %s1863_s7 }
   0x7   :  { %1889 = sst [smem:[#allocation30_spill]] %s1864_s8 }
   0x8   :  { %13 = vsyncpa [#allocation3], 0 }
   0x9   :  { %15 = vsyncpa [#allocation3 + $0x1], 0 }
   0xa   :  { %16 = vsyncpa [#allocation6], 0 }
   0xb   :  { %18 = vsyncpa [#allocation6 + $0x1], 0 }
   0xc   :  { %19 = vsyncpa [#allocation9], 0 }
   0xd   :  { %20 = vsyncpa [#allocation4], 0 }
   0xe   :  { %22 = vsyncpa [#allocation4 + $0x1], 0  ;;  %s1445_s27 = smov 0   ;;  %s1447_s28 = smov 0  }
   0xf   :  { %s1449_s29 = smov 0   ;;  %s1451_s30 = smov 0  }
  0x10   :  { %s1453_s9 = smov 0   ;;  %s1455_s10 = smov 0  }
  0x11   :  { %s1457_s11 = smov 0   ;;  %s1459_s12 = smov 0  }
  0x12   :  { %s1461_s13 = smov 0   ;;  %s1463_s14 = smov 0  }
  0x13   :  { %s1465_s15 = smov 0  }
  0x14 LB: > { %1890 = sst [smem:[#allocation16_spill]] %s1347_s28  ;;  %p1870_p0 = scmp.eq.s32.totalorder %s1383_s15, 0  ;;  %s1383_s15 = sphi %s1465_s15, %s28_s15   ;;  %s1379_s14 = sphi %s1463_s14, %s1948_s14   ;;  %s1375_s13 = sphi %s1461_s13, %s1947_s13   ;;  %s1371_s12 = sphi %s1459_s12, %s1946_s12   ;;  %s1367_s11 = sphi %s1457_s11, %s1945_s11   ;;  %s1363_s10 = sphi %s1455_s10, %s1944_s10   ;;  %s1359_s9 = sphi %s1453_s9, %s1943_s9   ;;  %s1355_s30 = sphi %s1451_s30, %s1942_s30   ;;  %s1351_s29 = sphi %s1449_s29, %s1941_s29   ;;  %s1347_s28 = sphi %s1447_s28, %s1940_s28   ;;  %s1343_s27 = sphi %s1445_s27, %s1938_s27  }
  0x15   : > { %1891 = sst [smem:[#allocation17_spill]] %s1355_s30  ;;  %p82_p1 = scmp.ne.s32.totalorder %s1351_s29, %s1347_s28 }
  0x16   : > { %1892 = sst [smem:[#allocation18_spill]] %s1367_s11  ;;  %p1865_p2 = scmp.lt.s32.totalorder %s1383_s15, 4 }
  0x17   : > { %1893 = sst [smem:[#allocation19_spill]] %s1371_s12  ;;  %p84_p3 = por %p82_p1, %p1870_p0 }
  0x18   : > { %s318_s18 = sand.u32 1, %s1383_s15   ;;  %s320_s19 = sand.u32 1, %s1351_s29  }
  0x19   : > { %s946_s20 = sshll.u32 %s320_s19, 2  ;;  %s947_s21 = sshll.u32 %s1379_s14, 6 }
  0x1a   : > { %s1894_s1 = sld [smem:[#allocation24_spill]]  ;;  %s322_s25 = scalar_lea.vmem [#allocation5], %s946_s20 }
  0x1b   : > { %s329_s26 = sshll.u32 %s322_s25, 4  ;;  %p1518_p4 = pnand %p1865_p2, %p84_p3  ;;  %s1522_s26 = int_to_ptr.vmem [resolvable:$true] %s329_s26 }
  0x1c   : > { %s1524_s19 = scalar_lea.sflag [#allocation6], %s318_s18 }
  0x1d   : > { %p1133_p6 = pneg %p1518_p4 }
  0x20   : > { %s1514_s24 = scalar_lea.hbm %s1894_s1, %s947_s21  ;;  %s1136_s23 = scalar_lea.hbm %s1894_s1, 128 }
  0x21   : > { %s1131_s22 = scalar_lea.hbm %s1514_s24, 64  ;;  %p1137_p9 = scmp.lt.u32.totalorder %s1514_s24, %s1894_s1 }
  0x22   : > { %p1132_p5 = scmp.ne.s32.totalorder %s1514_s24, %s1131_s22  ;;  %p1138_p10 = scmp.lt.u32.totalorder %s1136_s23, %s1131_s22 }
  0x23   : > { %p1140_p12 = scmp.lt.u32.totalorder %s1131_s22, %s1514_s24 }
  0x24   : > { %p1134_p7 = pnand %p1133_p6, %p1132_p5  ;;  %p1139_p11 = por %p1138_p10, %p1137_p9 }
  0x26   : > { %p1135_p8 = pneg %p1134_p7  ;;  %p1141_p13 = por %p1140_p12, %p1139_p11 }
  0x28   : > { %p1142_p1 = pnand %p1141_p13, %p1135_p8 }
  0x2a   : > { %1145 = shalt.err (!%p1142_p1)
}
  0x2b   : > { %s1146_s18 = scalar_lea.vmem %s1522_s26, 64  ;;  %s1385_s20 = smov [#allocation5]  }
  0x2c   : > { %p1147_p3 = scmp.ne.s32.totalorder %s1522_s26, %s1146_s18  ;;  %s1151_s21 = sshll.u32 %s1385_s20, 4  ;;  %s1152_s21 = int_to_ptr.vmem [resolvable:$false] %s1151_s21 }
  0x2d   : > { %s1153_s16 = scalar_lea.vmem %s1152_s21, 128  ;;  %p1154_p2 = scmp.lt.s32.totalorder %s1522_s26, %s1152_s21 }
  0x2e   : > { %p1149_p5 = pnand %p1147_p3, %p1133_p6  ;;  %p1155_p9 = scmp.lt.s32.totalorder %s1153_s16, %s1146_s18 }
  0x30   : > { %p1150_p7 = pneg %p1149_p5  ;;  %p1156_p10 = por %p1155_p9, %p1154_p2 }
  0x32   : > { %p1157_p11 = pnand %p1156_p10, %p1150_p7 }
  0x34   : > { %1160 = shalt.err (!%p1157_p11)
}
  0x35   : > { %1011 = dma.hbm_to_vmem [thread:$0]  (!%p1518_p4), %s1514_s24, 64, %s1522_s26, %s1524_s19  }
  0x36   : > { %s1553_s22 = sadd.s32 4294967295, %s1383_s15   ;;  %s939_s23 = sadd.s32 4294967294, %s1383_s15  }
  0x37   : > { %p62_p2 = scmp.ne.s32.totalorder %s1359_s9, %s1355_s30  ;;  %p1869_p6 = scmp.eq.s32.totalorder %s1553_s22, 0 }
  0x38   : > { %p88_p8 = scmp.ne.s32.totalorder %s1347_s28, %s1343_s27  ;;  %p258_p4 = scmp.eq.s32.totalorder %s939_s23, 3 }
  0x39   : > { %p1564_p13 = por %p1869_p6, %p62_p2  ;;  %p940_p3 = scmp.ge.s32.totalorder %s1383_s15, 1 }
  0x3a   : > { %p1570_p1 = por %p88_p8, %p1869_p6  ;;  %p1575_p5 = por %p258_p4, %p62_p2 }
  0x3b   : > { %s1896_s17 = scalar_select %p1564_p13, 1, 0 }
  0x3c   : > { %s1897_s24 = scalar_select %p1570_p1, 1, 0 }
  0x3d   : > { %s1899_s26 = scalar_select %p1575_p5, 1, 0 }
  0x3e   : > { %1898 = sst [smem:[#allocation20_spill]] %s1897_s24  ;;  %p265_p7 = scmp.lt.s32.totalorder %s1383_s15, 5 }
  0x3f   : > { %1900 = sst [smem:[#allocation21_spill]] %s1899_s26  ;;  %s1386_s25 = smov [#allocation8]  }
  0x40   : > { %p1580_p9 = pnand %p940_p3, %p265_p7  ;;  %s278_s18 = sshll.u32 %s1386_s25, 4  ;;  %s279_s18 = int_to_ptr.vmem [resolvable:$true] %s278_s18 }
  0x41   : > { %s37_s21 = sadd.s32 1, %s1375_s13  ;;  %s1904_s4 = sld [smem:[#allocation26_spill]] }
  0x42   : > { %s1901_s27 = scalar_select %p1580_p9, 1, 0 }
  0x43   : > { %p1001_p10 = pneg %p1580_p9  ;;  %p1593_p2 = scmp.ge.s32.totalorder %s37_s21, 2 }
  0x45   : > { %p1588_p11 = pnand %p1001_p10, %p1869_p6 }
  0x46   : > { %s1903_s16 = scalar_select %p1593_p2, 1, 0 }
  0x47   : > { %s1161_s25 = scalar_lea.hbm %s1904_s4, 128  ;;  %p1163_p3 = pneg %p1588_p11 }
  0x48   : > { %p1162_p4 = scmp.ne.s32.totalorder %s1904_s4, %s1161_s25  ;;  %p1168_p6 = scmp.lt.u32.totalorder %s1161_s25, %s1904_s4 }
  0x4a   : > { %p1164_p7 = pnand %p1163_p3, %p1162_p4 }
  0x4c   : > { %p1165_p10 = pneg %p1164_p7 }
  0x4e   : > { %p1170_p12 = pnand %p1168_p6, %p1165_p10 }
  0x50   : > { %1173 = shalt.err (!%p1170_p12)
}
  0x51   : > { %s1174_s23 = scalar_lea.vmem %s279_s18, 128  ;;  %p1182_p1 = scmp.lt.s32.totalorder %s279_s18, %s279_s18 }
  0x52   : > { %p1175_p0 = scmp.ne.s32.totalorder %s279_s18, %s1174_s23  ;;  %p1183_p13 = scmp.lt.s32.totalorder %s1174_s23, %s1174_s23 }
  0x54   : > { %p1177_p8 = pnand %p1175_p0, %p1163_p3  ;;  %p1184_p9 = por %p1183_p13, %p1182_p1 }
  0x56   : > { %p1178_p5 = pneg %p1177_p8 }
  0x58   : > { %p1185_p2 = pnand %p1184_p9, %p1178_p5 }
  0x5a   : > { %1188 = shalt.err (!%p1185_p2)
}
  0x5b   : > { %1004 = dma.hbm_to_vmem [thread:$0]  (!%p1588_p11), %s1904_s4, 128, %s279_s18, [#allocation9]  }
  0x5c   : > { %p1905_p0 = scmp.ne.s32.totalorder %s1903_s16, 0  ;;  %s1907_s6 = sadd.s32 1, %s1379_s14 }
  0x5d   : > { %p1908_p6 = scmp.ne.s32.totalorder %s1363_s10, %s1359_s9  ;;  %p1909_p12 = scmp.eq.s32.totalorder %s1383_s15, 0 }
  0x5e   : > { %s1950_s21 = smov (%p1905_p0, %s37_s21), 0  ;;  %s1952_s6 = smov (!%p1905_p0, %s1907_s6), %s1379_s14 }
  0x5f   : > { %1906 = sst [smem:[#allocation22_spill]] %s1950_s21  ;;  %s45_s30 = ssub.s32 %s1375_s13, %s1950_s21 }
  0x60   : > { %p1632_p13 = por %p1909_p12, %p1908_p6  ;;  %p42_p1 = scmp.ge.s32.totalorder %s1952_s6, 2 }
  0x61   : > { %p1911_p5 = pmov %p1908_p6  ;;  %p1912_p9 = scmp.eq.s32.totalorder %s1553_s22, 3 }
  0x62   : > { %s1646_s18 = sand.u32 1, %s1363_s10   ;;  %s944_s20 = sshll.u32 %s1379_s14, 1 }
  0x63   : > { %p1641_p11 = por %p1912_p9, %p1911_p5  ;;  %s1954_s6 = smov (%p42_p1, %s1952_s6), 0 }
  0x64   : > { %s943_s16 = sshll.u32 %s1646_s18, 2  ;;  %s44_s23 = ssub.s32 %s1379_s14, %s1954_s6 }
  0x65   : > { %s1913_s26 = scalar_select %p1641_p11, 1, 0 }
  0x66   : > { %s46_s25 = sor.u32 %s45_s30, %s44_s23  ;;  %p73_p2 = scmp.eq.s32.totalorder %s44_s23, 0 }
  0x67   : > { %1914 = sst [smem:[#allocation23_spill]] %s1913_s26  ;;  %p47_p8 = scmp.eq.s32.totalorder %s46_s25, 0 }
  0x68   : > { %s307_s1 = sadd.s32 %s1375_s13, %s944_s20  ;;  %s1915_s8 = sadd.s32 1, %s1351_s29 }
  0x69   : > { %s1658_s4 = scalar_select %p73_p2, %s1351_s29, %s1915_s8  }
  0x6a   : > { %s1916_s21 = sadd.s32 1, %s1363_s10  ;;  %s945_s3 = sshll.u32 %s307_s1, 6 }
  0x6b   : > { %s1663_s26 = scalar_select %p47_p8, %s1363_s10, %s1916_s21  }
  0x6c   : > { %s302_s7 = scalar_lea.vmem [#allocation2], %s943_s16  ;;  %s1668_s28 = scalar_lea.hbm %s1856_s0, %s945_s3 }
  0x6d   : > { %s311_s5 = sshll.u32 %s302_s7, 4  ;;  %p1917_p4 = scmp.lt.s32.totalorder %s1383_s15, 4  ;;  %s1670_s5 = int_to_ptr.vmem [resolvable:$true] %s311_s5 }
  0x6e   : > { %s950_s7 = sshll.u32 %s307_s1, 7  ;;  %s948_s21 = sshll.u32 %s1646_s18, 3 }
  0x6f   : > { %p1676_p3 = pnand %p1917_p4, %p1632_p13  ;;  %s1684_s3 = scalar_lea.hbm %s1858_s2, %s950_s7 }
  0x70   : > { %s299_s24 = scalar_lea.sflag [#allocation3], %s1646_s18  ;;  %s1189_s16 = scalar_lea.hbm %s1668_s28, 64 }
  0x71   : > { %p1190_p7 = scmp.ne.s32.totalorder %s1668_s28, %s1189_s16  ;;  %p1191_p10 = pneg %p1676_p3 }
  0x72   : > { %s1194_s25 = scalar_lea.hbm %s1856_s0, 256  ;;  %p1195_p12 = scmp.lt.u32.totalorder %s1668_s28, %s1856_s0 }
  0x73   : > { %p1192_p0 = pnand %p1191_p10, %p1190_p7  ;;  %p1196_p13 = scmp.lt.u32.totalorder %s1194_s25, %s1189_s16 }
  0x74   : > { %p1198_p5 = scmp.lt.u32.totalorder %s1189_s16, %s1668_s28 }
  0x75   : > { %p1193_p6 = pneg %p1192_p0  ;;  %p1197_p1 = por %p1196_p13, %p1195_p12 }
  0x77   : > { %p1199_p9 = por %p1198_p5, %p1197_p1 }
  0x79   : > { %p1200_p2 = pnand %p1199_p9, %p1193_p6 }
  0x7b   : > { %1203 = shalt.err (!%p1200_p2)
}
  0x7c   : > { %s1204_s7 = scalar_lea.vmem %s1670_s5, 64  ;;  %s1387_s20 = smov [#allocation2]  }
  0x7d   : > { %p1205_p8 = scmp.ne.s32.totalorder %s1670_s5, %s1204_s7  ;;  %s1209_s12 = sshll.u32 %s1387_s20, 4  ;;  %s1210_s12 = int_to_ptr.vmem [resolvable:$false] %s1209_s12 }
  0x7e   : > { %s1211_s11 = scalar_lea.vmem %s1210_s12, 128  ;;  %p1212_p0 = scmp.lt.s32.totalorder %s1670_s5, %s1210_s12 }
  0x7f   : > { %p1207_p4 = pnand %p1205_p8, %p1191_p10  ;;  %p1213_p12 = scmp.lt.s32.totalorder %s1211_s11, %s1204_s7 }
  0x81   : > { %p1208_p7 = pneg %p1207_p4  ;;  %p1214_p13 = por %p1213_p12, %p1212_p0 }
  0x83   : > { %p1215_p1 = pnand %p1214_p13, %p1208_p7 }
  0x85   : > { %1218 = shalt.err (!%p1215_p1)
}
  0x86   : > { %1008 = dma.hbm_to_vmem [thread:$0]  (!%p1676_p3), %s1668_s28, 64, %s1670_s5, %s299_s24  }
  0x87   : > { %s340_s16 = scalar_lea.vmem [#allocation7], %s948_s21  ;;  %s1219_s25 = scalar_lea.hbm %s1684_s3, 128 }
  0x88   : > { %s349_s23 = sshll.u32 %s340_s16, 4  ;;  %p1220_p6 = scmp.ne.s32.totalorder %s1684_s3, %s1219_s25  ;;  %s350_s23 = int_to_ptr.vmem [resolvable:$true] %s349_s23 }
  0x89   : > { %s1224_s7 = scalar_lea.hbm %s1858_s2, 512  ;;  %p1225_p2 = scmp.lt.u32.totalorder %s1684_s3, %s1858_s2 }
  0x8a   : > { %p1222_p5 = pnand %p1220_p6, %p1191_p10  ;;  %p1226_p8 = scmp.lt.u32.totalorder %s1224_s7, %s1219_s25 }
  0x8b   : > { %p1228_p7 = scmp.lt.u32.totalorder %s1219_s25, %s1684_s3 }
  0x8c   : > { %p1223_p9 = pneg %p1222_p5  ;;  %p1227_p4 = por %p1226_p8, %p1225_p2 }
  0x8e   : > { %p1229_p0 = por %p1228_p7, %p1227_p4 }
  0x90   : > { %p1230_p12 = pnand %p1229_p0, %p1223_p9 }
  0x92   : > { %1233 = shalt.err (!%p1230_p12)
}
  0x93   : > { %s1234_s5 = scalar_lea.vmem %s350_s23, 128  ;;  %s1388_s28 = smov [#allocation7]  }
  0x94   : > { %p1235_p13 = scmp.ne.s32.totalorder %s350_s23, %s1234_s5  ;;  %s1239_s18 = sshll.u32 %s1388_s28, 4  ;;  %s1240_s18 = int_to_ptr.vmem [resolvable:$false] %s1239_s18 }
  0x95   : > { %s1241_s21 = scalar_lea.vmem %s1240_s18, 256  ;;  %p1242_p5 = scmp.lt.s32.totalorder %s350_s23, %s1240_s18 }
  0x96   : > { %p1237_p1 = pnand %p1235_p13, %p1191_p10  ;;  %p1243_p11 = scmp.lt.s32.totalorder %s1241_s21, %s1234_s5 }
  0x98   : > { %p1238_p6 = pneg %p1237_p1  ;;  %p1244_p2 = por %p1243_p11, %p1242_p5 }
  0x9a   : > { %p1245_p8 = pnand %p1244_p2, %p1238_p6 }
  0x9c   : > { %1248 = shalt.err (!%p1245_p8)
}
  0x9d   : > { %1014 = dma.hbm_to_vmem [thread:$0]  (!%p1676_p3), %s1684_s3, 128, %s350_s23, %s1524_s19  }
  0x9e   : > { %p1919_p9 = scmp.ne.s32.totalorder %s1901_s27, 0 }
  0x9f   : > { %s1737_s24 = sand.u32 (!%p1919_p9), 1, %s1359_s9   ;;  %p1920_p11 = scmp.ne.s32.totalorder (!%p1919_p9), %s1896_s17, 0 }
  0xa0   : > { %365 = sbr.rel (%p1919_p9) target bundleno = 656 (0x290), region = 52  ;;  %s952_s11 = sshll.u32 (!%p1919_p9), %s1737_s24, 2 }
  0xa1   : > { %s368_s16 = scalar_lea.sflag (!%p1919_p9), [#allocation3], %s1737_s24  ;;  %s1743_s25 = scalar_lea.vmem (!%p1919_p9), [#allocation2], %s952_s11 }
  0xa7   : > { %1322 = dma.done.wait (%p1920_p11), %s368_s16, 64  }
  0xa8   : > { %1324 = vsyncadd (%p1920_p11), %s368_s16, 4294967232  ;;  %s1921_s19 = sld [smem:[#allocation16_spill]]  ;;  %s1922_s27 = sld [smem:[#allocation20_spill]] }
  0xa9   : > { %s376_s30 = sand.u32 1, %s1553_s22  }
  0xaa   : > { %s377_s1 = scalar_lea.sflag [#allocation6], %s376_s30 }
  0xae   : > { %s378_s3 = sand.u32 1, %s1921_s19   ;;  %p1923_p3 = scmp.ne.s32.totalorder %s1922_s27, 0 }
  0xaf   : > { %s953_s23 = sshll.u32 %s378_s3, 2 }
  0xb0   : > { %s380_s8 = scalar_lea.vmem [#allocation5], %s953_s23 }
  0xb1   : > { %1326 = dma.done.wait (%p1923_p3), %s377_s1, 64  }
  0xb2   : > { %1328 = vsyncadd (%p1923_p3), %s377_s1, 4294967232  ;;  %s954_s7 = sshll.u32 %s1737_s24, 3 }
  0xb3   : > { %s389_s20 = scalar_lea.vmem [#allocation7], %s954_s7 }
  0xb4   : > { %1330 = dma.done.wait (%p1920_p11), %s377_s1, 128  }
  0xb5   : > { %1332 = vsyncadd (%p1920_p11), %s377_s1, 4294967168  ;;  %p1924_p10 = scmp.eq.s32.totalorder %s1553_s22, 0 }
  0xb7   : > { %1334 = dma.done.wait (%p1924_p10), [#allocation9], 128   ;;  %p1925_p4 = pmov %p1924_p10 }
  0xb8   : > { %v1389_v0 = vmov 0.0   ;;  %vm1390_vm0 = vmmov 0   ;;  %v1391_v1 = vmov 2   ;;  %v1392_v2 = vmov 0   ;;  %v447_v3 = vld [vmem:[#allocation8] sm:$0xff]  ;;  %v446_v4 = vld [vmem:[%s389_s20] sm:$0xff] }
  0xb9   : > { %1336 = vsyncadd (%p1925_p4), [#allocation9], 4294967168  ;;  %974 = vmatprep.subr.mxu0 %v1389_v0  ;;  %976 = vmatprep.mubr.msk.f32.mxu0 %vm1390_vm0, %v1389_v0  ;;  %vm448_vm1 = vcmask 64512   ;;  %v445_v5 = vld [vmem:[%s380_s8] sm:$0xf]  ;;  %v1393_v6 = vmov 3   ;;  %v529_v16 = vlaneseq }
  0xba   : > { %1124 = vset.pattern.permute.xlu1 %v1391_v1  ;;  %1122 = vset.pattern.permute.xlu0 %v1392_v2  ;;  %v1394_v7 = vmov 1   ;;  %v1395_v8 = vmov 4   ;;  %v1396_v9 = vmov 5   ;;  %s1926_s22 = sld [smem:[#allocation19_spill]]  ;;  %v1397_v10 = vmov 6   ;;  %s1928_s21 = sld [smem:[#allocation29_spill]] }
  0xbb   : > { %979 = vmatprep.subr.mxu1 %v1389_v0  ;;  %981 = vmatprep.mubr.msk.f32.mxu1 %vm1390_vm0, %v1389_v0  ;;  %v1398_v11 = vmov 7   ;;  %v444_v12 = vld [vmem:[%s1743_s25] sm:$0xf]  ;;  %vm612_vm2 = vcmask 1043456   ;;  %s1927_s5 = sld [smem:[#allocation27_spill]]  ;;  %vm608_vm3 = vcmask 31744  }
  0xbc   : > { %975 = vmatpush3.msra.mxu0 %v447_v3  ;;  %545 = vperm.xlu1 %1124, %v445_v5   ;;  %s1929_s30 = sld [smem:[#allocation25_spill]]  ;;  %v530_v17 = vshrl.u32 %v529_v16, 7  ;;  %s1930_s23 = sld [smem:[#allocation18_spill]] }
  0xbd   : > { %977 = vmatmul.mubr.msk.f32.vlgmr.msra.gmra.mrb[0].mxu0 %vm448_vm1, %v446_v4  ;;  %526 = vperm.xlu0 %1122, %v445_v5   ;;  %s1931_s7 = sld [smem:[#allocation28_spill]]  ;;  %s1932_s17 = sld [smem:[#allocation23_spill]] }
  0xbe   : > { %984 = vmatprep.subr.mxu0 %v1389_v0  ;;  %986 = vmatprep.mubr.msk.f32.mxu0 %vm1390_vm0, %v1389_v0  ;;  %v531_v21 = vsub.s32 0, %v530_v17  ;;  %v540_v22 = vsub.s32 1, %v530_v17  ;;  %v550_v23 = vsub.s32 2, %v530_v17  ;;  %v560_v27 = vsub.s32 3, %v530_v17  ;;  %s439_s28 = scalar_lea.vmem [#allocation10], %s952_s11  ;;  %s1399_s11 = smov [#allocation10]  }
  0xbf   : > { %985 = vmatpush3.msk.msra.mxu0 %vm612_vm2, %v444_v12  ;;  %v570_v32 = vsub.s32 4, %v530_v17  ;;  %v580_v37 = vsub.s32 5, %v530_v17  ;;  %v590_v38 = vsub.s32 6, %v530_v17  ;;  %v600_v44 = vsub.s32 7, %v530_v17  ;;  %s786_s18 = sshll.u32 %s439_s28, 4  ;;  %s1795_s18 = int_to_ptr.vmem [resolvable:$true] %s786_s18 }
  0xc0   : > { %1125 = vset.pattern.permute.xlu1 %v1393_v6  ;;  %v762_v14 = vld [vmem:[%s1928_s21] sm:$0xf]  ;;  %p440_p7 = scmp.lt.s32.totalorder %s1926_s22, 1  ;;  %s964_s20 = sshll.u32 %s1926_s22, 1 }
  0xc1   : > { %555 = vperm.xlu1 %1125, %v445_v5   ;;  %1123 = vset.pattern.permute.xlu0 %v1394_v7  ;;  %v606_v13 = vld [vmem:[%s1927_s5] sm:$0xf]  ;;  %s1249_s27 = scalar_lea.vmem %s1795_s18, 64 }
  0xc2   : > { %535 = vperm.xlu0 %1123, %v445_v5   ;;  %987 = vmatmul.mubr.msk.f32.vlgmr.msra.gmra.mrb[2].mxu0 %vm608_vm3, %v606_v13  ;;  %s441_s16 = scalar_select %p440_p7, %s1926_s22, 1 }
  0xc3   : > { %v607_v62 = vld [vmem:[%s1931_s7] sm:$0xf]  ;;  %s782_s12 = sadd.s32 %s1930_s23, %s964_s20  ;;  %s771_s22 = scalar_lea.sflag [#allocation4], %s1737_s24 }
  0xc4   : > { %s957_s25 = sshll.u32 %s441_s16, 3  ;;  %s965_s5 = sshll.u32 %s782_s12, 6 }
  0xc5   : > { %1126 = vset.pattern.permute.xlu1 %v1395_v8  ;;  %s443_s3 = scalar_lea.vmem %s1929_s30, %s957_s25  ;;  %s1933_s25 = sld [smem:[#allocation30_spill]] }
  0xc6   : > { %565 = vperm.xlu1 %1126, %v445_v5   ;;  %1127 = vset.pattern.permute.xlu0 %v1396_v9  ;;  %v522_v20 = vld [vmem:[%s443_s3] sm:$0xff]  ;;  %p1250_p0 = scmp.ne.s32.totalorder %s1795_s18, %s1249_s27  ;;  %p1934_p12 = scmp.ne.s32.totalorder %s1932_s17, 0 }
  0xc7   : > { %575 = vperm.xlu0 %1127, %v445_v5   ;;  %s1253_s30 = sshll.u32 %s1399_s11, 4  ;;  %s1254_s30 = int_to_ptr.vmem [resolvable:$false] %s1253_s30 }
  0xc8   : > { %p1251_p13 = pnand %p1250_p0, %p1934_p12  ;;  %s1255_s3 = scalar_lea.vmem %s1254_s30, 128 }
  0xc9   : > { %p1256_p6 = scmp.lt.s32.totalorder %s1795_s18, %s1254_s30  ;;  %p1257_p5 = scmp.lt.s32.totalorder %s1255_s3, %s1249_s27 }
  0xca   : > { %1128 = vset.pattern.permute.xlu1 %v1397_v10  ;;  %p1252_p1 = pneg %p1251_p13 }
  0xcb   : > { %585 = vperm.xlu1 %1128, %v445_v5   ;;  %1130 = vset.pattern.permute.xlu0 %v1392_v2  ;;  %s1793_s19 = scalar_lea.hbm %s1933_s25, %s965_s5  ;;  %p1258_p2 = por %p1257_p5, %p1256_p6 }
  0xcc   : > { %765 = vperm.xlu0 %1130, %v762_v14  }
  0xcd   : > { %p1259_p8 = pnand %p1258_p2, %p1252_p1 }
  0xcf   : > { %1129 = vset.pattern.permute.xlu1 %v1398_v11 }
  0xd0   : > { %595 = vperm.xlu1 %1129, %v445_v5  }
 0x13b   : > { %v546_v15 = vpop.permute.xlu1 %545 }
 0x13c   : > { %v527_v19 = vpop.permute.xlu0 %526 }
 0x140   : > { %v556_v18 = vpop.permute.xlu1 %555 }
 0x141   : > { %v536_v33 = vpop.permute.xlu0 %535 }
 0x145   : > { %v566_v28 = vpop.permute.xlu1 %565 }
 0x146   : > { %v576_v47 = vpop.permute.xlu0 %575 }
 0x14a   : > { %v586_v42 = vpop.permute.xlu1 %585 }
 0x14b   : > { %v766_v2 = vpop.permute.xlu0 %765 }
 0x14f   : > { %v596_v54 = vpop.permute.xlu1 %595 }
 0x190   : > { %v518_v24 = vpop.f32.mrb[0].mxu0 }
 0x191   : > { %v523_v25 = vmul.f32 %v522_v20, %v518_v24  ;;  %v978_v26 = vpop.f32.mrb[1].mxu0 }
 0x193   : > { %v532_v29 = vrot.slane %v523_v25, %v531_v21  ;;  %v541_v30 = vrot.slane %v523_v25, %v540_v22  ;;  %v551_v31 = vrot.slane %v523_v25, %v550_v23  ;;  %v561_v36 = vrot.slane %v523_v25, %v560_v27 }
 0x194   : > { %v571_v41 = vrot.slane %v523_v25, %v570_v32  ;;  %v581_v46 = vrot.slane %v523_v25, %v580_v37  ;;  %v591_v48 = vrot.slane %v523_v25, %v590_v38  ;;  %v601_v51 = vrot.slane %v523_v25, %v600_v44 }
 0x195   : > { %v533_v34 = vmul.f32 %v532_v29, %v527_v19  ;;  %v542_v35 = vmul.f32 %v541_v30, %v536_v33  ;;  %v552_v39 = vmul.f32 %v551_v31, %v546_v15  ;;  %v562_v45 = vmul.f32 %v561_v36, %v556_v18  ;;  %v758_v63 = vpop.f32.mrb[2].mxu0 }
 0x196   : > { %v572_v50 = vmul.f32 %v571_v41, %v566_v28  ;;  %v582_v53 = vmul.f32 %v581_v46, %v576_v47  ;;  %v592_v55 = vmul.f32 %v591_v48, %v586_v42  ;;  %v602_v57 = vmul.f32 %v601_v51, %v596_v54  ;;  %v988_v0 = vpop.f32.mrb[3].mxu0 }
 0x197   : > { %v543_v40 = vadd.f32 %v542_v35, %v533_v34 }
 0x199   : > { %v553_v43 = vadd.f32 %v552_v39, %v543_v40 }
 0x19b   : > { %v563_v49 = vadd.f32 %v562_v45, %v553_v43 }
 0x19d   : > { %v573_v52 = vadd.f32 %v572_v50, %v563_v49 }
 0x19f   : > { %v583_v56 = vadd.f32 %v582_v53, %v573_v52 }
 0x1a1   : > { %v593_v58 = vadd.f32 %v592_v55, %v583_v56 }
 0x1a3   : > { %v603_v59 = vadd.f32 %v602_v57, %v593_v58 }
 0x1a5   : > { %v604_v60 = vmul.f32 %v603_v59, %v444_v12 }
 0x1a7   : > { %v605_v61 = vmax.f32 %v604_v60, 0.0 }
 0x1a9   : > { %980 = vmatpush3.msk.msra.mxu1 %vm612_vm2, %v605_v61 }
 0x1aa   : > { %982 = vmatmul.mubr.msk.f32.vlgmr.msra.gmra.mrb[0].mxu1 %vm608_vm3, %v607_v62 }
 0x27d   : > { %v682_v1 = vpop.f32.mrb[0].mxu1 }
 0x27e   : > { %v759_v3 = vadd.f32 %v758_v63, %v682_v1  ;;  %v983_v4 = vpop.f32.mrb[1].mxu1 }
 0x280   : > { %v768_v5 = vadd.f32 %v766_v2, %v759_v3 }
 0x282   : > { %769 = vst [vmem:[%s439_s28] sm:$0xf] %v768_v5 }
 0x283   : > { %1262 = shalt.err (!%p1259_p8)
}
 0x284   : > { %s1263_s24 = scalar_lea.hbm %s1793_s19, 64  ;;  %s1267_s8 = scalar_lea.hbm %s1933_s25, 256 }
 0x285   : > { %p1264_p9 = scmp.ne.s32.totalorder %s1793_s19, %s1263_s24  ;;  %p1268_p10 = scmp.lt.u32.totalorder %s1793_s19, %s1933_s25 }
 0x286   : > { %p1269_p4 = scmp.lt.u32.totalorder %s1267_s8, %s1263_s24  ;;  %p1271_p0 = scmp.lt.u32.totalorder %s1263_s24, %s1793_s19 }
 0x287   : > { %p1265_p11 = pnand %p1264_p9, %p1934_p12 }
 0x288   : > { %p1270_p7 = por %p1269_p4, %p1268_p10 }
 0x289   : > { %p1266_p3 = pneg %p1265_p11 }
 0x28a   : > { %p1272_p13 = por %p1271_p0, %p1270_p7 }
 0x28c   : > { %p1273_p1 = pnand %p1272_p13, %p1266_p3 }
 0x28e   : > { %1276 = shalt.err (!%p1273_p1)
}
 0x28f   : > { %999 = dma.vmem_to_hbm [thread:$0]  (%p1934_p12), %s1795_s18, 64, %s1793_s19, %s771_s22  }
 0x290 PF: > { %s1935_s12 = sld [smem:[#allocation17_spill]]  ;;  %s1936_s5 = sld [smem:[#allocation21_spill]] }
 0x291   : > { %p1022_p6 = scmp.ge.s32.totalorder %s1383_s15, 2 }
 0x296   : > { %s798_s28 = sand.u32 1, %s1935_s12   ;;  %p1937_p5 = scmp.ne.s32.totalorder %s1936_s5, 0 }
 0x297   : > { %s799_s21 = scalar_lea.sflag [#allocation4], %s798_s28 }
 0x298   : > { %p1016_p2 = pnand %p1022_p6, %p1937_p5 }
 0x29a   : > { %1338 = dma.done.wait (!%p1016_p2), %s799_s21, 64  }
 0x29b   : > { %1340 = vsyncadd (!%p1016_p2), %s799_s21, 4294967232  ;;  %s28_s15 = sadd.s32 1, %s1383_s15   ;;  %s1938_s27 = sld [smem:[#allocation16_spill]] }
 0x29c   : > { %p25_p8 = scmp.ge.s32.totalorder %s28_s15, 6   ;;  %s1939_s17 = sld [smem:[#allocation22_spill]] }
 0x29d   : > { %s1940_s28 = smov %s1351_s29  ;;  %s1941_s29 = smov %s1658_s4 }
 0x29e   : > { %s1942_s30 = smov %s1359_s9  ;;  %s1943_s9 = smov %s1363_s10 }
 0x29f   : > { %s1944_s10 = smov %s1663_s26  ;;  %s1945_s11 = smov %s1375_s13 }
 0x2a0   : > { %s1946_s12 = smov %s1379_s14  ;;  %s1948_s14 = smov %s1954_s6 }
 0x2a1   :  { %27 = sbr.rel (!%p25_p8) target bundleno = 20 (0x14), region = 128 }
 0x2a2   : > { %s1947_s13 = smov %s1939_s17 }
 0x2a8   :  { %804 = vsyncpa [#allocation3], 1 }
 0x2a9   :  { %806 = vsyncpa [#allocation3 + $0x1], 1 }
 0x2aa   :  { %807 = vsyncpa [#allocation6], 1 }
 0x2ab   :  { %809 = vsyncpa [#allocation6 + $0x1], 1 }
 0x2ac   :  { %810 = vsyncpa [#allocation9], 1 }
 0x2ad   :  { %811 = vsyncpa [#allocation4], 1 }
 0x2ae   :  { %813 = vsyncpa [#allocation4 + $0x1], 1 }

</bundles_post_ra>
